<compile_context>
chip_gen: v5e
topology: v5e:2x2
jax: 0.10.0
libtpu: 0.0.40
codegen_flags: <defaults>
</compile_context>

<pallas_src>
import jax
import jax.numpy as jnp
from jax.experimental import pallas as pl
from jax.experimental.pallas import tpu as pltpu


def _downsample_kernel(xa_ref, xh_ref, w_ref, o_ref):
    # xa_ref: (TH2, 2, W2+1, 2*Cin)  main coarse rows of folded, padded input
    # xh_ref: (1,   2, W2+1, 2*Cin)  +1 coarse-row halo
    # w_ref : (16*Cin, 4*Cout)       fused conv4x4/stride2 weights
    # o_ref : (TH2, W2, 4*Cout)      pixel-unshuffled output tile
    TH2, _, W2p1, _ = xa_ref.shape
    W2 = W2p1 - 1
    K = w_ref.shape[0]
    C4 = o_ref.shape[-1]

    xa = xa_ref[...]
    xh = xh_ref[...]
    x0 = xa                                                # coarse row h2 + 0
    if TH2 > 1:                                            # coarse row h2 + 1
        x1 = jnp.concatenate([xa[1:], xh], axis=0)
    else:
        x1 = xh

    def windows(v):
        # v: (TH2, W2+1, 2*Cin) -> (TH2, W2, 4*Cin) overlapping width windows
        return jnp.concatenate([v[:, :W2, :], v[:, 1:, :]], axis=-1)

    # K ordering = (ry, rx, ci) with ry = 2*a + p, rx = 2*bq + q  (matches W4).
    patches = jnp.concatenate(
        [windows(x0[:, 0]),     # ry = 0
         windows(x0[:, 1]),     # ry = 1
         windows(x1[:, 0]),     # ry = 2
         windows(x1[:, 1])],    # ry = 3
        axis=-1)                                           # (TH2, W2, 16*Cin)
    patches = patches.reshape(TH2 * W2, K)

    # Single well-shaped MXU matmul, f32 accumulation.
    out = jnp.dot(patches, w_ref[...], preferred_element_type=jnp.float32)
    o_ref[...] = out.reshape(TH2, W2, C4).astype(o_ref.dtype)


def _pick_row_tile(h2, w2, cin, budget_bytes=1 << 20):
    """Largest divisor of h2 whose folded-input block stays under ~1 MiB."""
    row_bytes = 2 * (w2 + 1) * 2 * cin * 4          # one coarse row, f32
    t = max(1, min(h2, budget_bytes // max(row_bytes, 1)))
    if h2 >= 2:                                     # keep >=2 row tiles so the
        t = min(t, max(1, h2 // 2))                 # spatial axis is parallel
    while h2 % t:
        t -= 1
    return t


def _build_fused_weight(w_oihw):
    """(Cout, Cin, 3, 3) -> (16*Cin, 4*Cout): conv3x3+PixelUnshuffle(2) fused."""
    cout, cin, _, _ = w_oihw.shape
    w_hwio = jnp.transpose(w_oihw, (2, 3, 1, 0))    # (3, 3, Cin, Cout)
    w4 = jnp.zeros((4, 4, cin, cout, 2, 2), w_oihw.dtype)
    for i in range(2):
        for j in range(2):
            w4 = w4.at[i:i + 3, j:j + 3, :, :, i, j].set(w_hwio)
    # K = (ry, rx, ci);  N = (co, i, j)  == PyTorch PixelUnshuffle channel order
    return w4.reshape(16 * cin, 4 * cout)


@jax.jit
def downsample_forward(x_nchw, w_oihw):
    """Full Downsample forward. x: (B, C, H, W), w: (C//2, C, 3, 3)."""
    B, C, H, W = x_nchw.shape
    assert C % 2 == 0 and H % 2 == 0 and W % 2 == 0
    cin, cout = C, C // 2
    H2, W2 = H // 2, W // 2
    c4 = 4 * cout                                   # == 2 * C

    # Layout glue (fuses into one XLA pass): NCHW -> padded NHWC, folded so the
    # kernel sees (coarse_row, row_parity, coarse_col, 2*Cin).
    x_nhwc = jnp.transpose(x_nchw, (0, 2, 3, 1))
    xpad = jnp.pad(x_nhwc, ((0, 0), (1, 1), (1, 1), (0, 0)))
    xq = xpad.reshape(B, H2 + 1, 2, W2 + 1, 2 * cin)

    w4 = _build_fused_weight(w_oihw)                # (16*Cin, 4*Cout)

    TH2 = _pick_row_tile(H2, W2, cin)
    nT = H2 // TH2

    grid_spec = pltpu.PrefetchScalarGridSpec(
        num_scalar_prefetch=0,
        grid=(B, nT),
        in_specs=[
            # main block: TH2 coarse rows
            pl.BlockSpec((None, TH2, 2, W2 + 1, 2 * cin),
                         lambda b, t: (b, t, 0, 0, 0)),
            # +1 coarse-row halo: same HBM array, block size 1 along rows
            pl.BlockSpec((None, 1, 2, W2 + 1, 2 * cin),
                         lambda b, t: (b, (t + 1) * TH2, 0, 0, 0)),
            # fused weights (resident, same block every step)
            pl.BlockSpec((16 * cin, c4), lambda b, t: (0, 0)),
        ],
        out_specs=pl.BlockSpec((None, TH2, W2, c4),
                               lambda b, t: (b, t, 0, 0)),
    )

    y = pl.pallas_call(
        _downsample_kernel,
        out_shape=jax.ShapeDtypeStruct((B, H2, W2, c4), x_nchw.dtype),
        grid_spec=grid_spec,
        compiler_params=pltpu.CompilerParams(
            dimension_semantics=("parallel", "parallel"),
            vmem_limit_bytes=64 * 1024 * 1024),
    )(xq, xq, w4)                                   # (B, H2, W2, 2*C)

    # TODO(synk): if the surrounding model runs NHWC, both this transpose and
    # the NCHW->NHWC one above can be dropped (kernel already fuses unshuffle).
    return jnp.transpose(y, (0, 3, 1, 2))           # (B, 2*C, H/2, W/2)


if __name__ == "__main__":
    key = jax.random.PRNGKey(0)
    B, C, H, W = 2, 4, 16, 16            # n_feat = 4
    kx, kw = jax.random.split(key)
    x = jax.random.normal(kx, (B, C, H, W), dtype=jnp.float32)
    # Conv2d weight: (out=C//2, in=C, 3, 3), no bias.
    w = jax.random.normal(kw, (C // 2, C, 3, 3), dtype=jnp.float32) * 0.1

    out = downsample_forward(x, w)
    out = jax.block_until_ready(out)
    assert out.shape == (B, 2 * C, H // 2, W // 2), out.shape

    # Reference: XLA conv (stride 1, pad 1) + PixelUnshuffle(2).
    y_ref = jax.lax.conv_general_dilated(
        x, w, window_strides=(1, 1), padding=((1, 1), (1, 1)),
        dimension_numbers=("NCHW", "OIHW", "NCHW"))
    Br, Cr, Hr, Wr = y_ref.shape
    ref = y_ref.reshape(Br, Cr, Hr // 2, 2, Wr // 2, 2)
    ref = jnp.transpose(ref, (0, 1, 3, 5, 2, 4)).reshape(Br, Cr * 4, Hr // 2, Wr // 2)
    assert jnp.allclose(out, ref, atol=1e-4, rtol=1e-4)

    print("KERNEL_OK")
</pallas_src>

<mosaic_0001>
module attributes {stable_mosaic.version = 11 : i64} {
  func.func @_downsample_kernel(%arg0: i32, %arg1: i32, %arg2: memref<1x4x2x9x8xf32, #tpu.memory_space<vmem>>, %arg3: memref<1x1x2x9x8xf32, #tpu.memory_space<vmem>>, %arg4: memref<64x8xf32, #tpu.memory_space<vmem>>, %arg5: memref<1x4x8x8xf32, #tpu.memory_space<vmem>>) attributes {dimension_semantics = [#tpu.dimension_semantics<parallel>, #tpu.dimension_semantics<parallel>], iteration_bounds = array<i64: 2, 2>, scalar_prefetch = 0 : i64, scratch_operands = 0 : i64, tpu.core_type = #tpu.core_type<tc>, window_params = [{transform_indices = @transform_0, window_bounds = array<i64: 1, 4, 2, 9, 8>}, {transform_indices = @transform_1, window_bounds = array<i64: 1, 1, 2, 9, 8>}, {pipeline_mode = #tpu.pipeline_mode<synchronous>, transform_indices = @transform_2, window_bounds = array<i64: 64, 8>}, {transform_indices = @transform_3, window_bounds = array<i64: 1, 4, 8, 8>}]} {
    %c0 = arith.constant 0 : index
    %c0_0 = arith.constant 0 : index
    %c0_1 = arith.constant 0 : index
    %c0_2 = arith.constant 0 : index
    %c0_3 = arith.constant 0 : index
    %0 = vector.load %arg2[%c0, %c0_0, %c0_1, %c0_2, %c0_3] : memref<1x4x2x9x8xf32, #tpu.memory_space<vmem>>, vector<1x4x2x9x8xf32>
    %1 = vector.shape_cast %0 : vector<1x4x2x9x8xf32> to vector<4x2x9x8xf32>
    %c0_4 = arith.constant 0 : index
    %c0_5 = arith.constant 0 : index
    %c0_6 = arith.constant 0 : index
    %c0_7 = arith.constant 0 : index
    %c0_8 = arith.constant 0 : index
    %2 = vector.load %arg3[%c0_4, %c0_5, %c0_6, %c0_7, %c0_8] : memref<1x1x2x9x8xf32, #tpu.memory_space<vmem>>, vector<1x1x2x9x8xf32>
    %3 = vector.shape_cast %2 : vector<1x1x2x9x8xf32> to vector<1x2x9x8xf32>
    %4 = vector.extract_strided_slice %1 {offsets = [1, 0, 0, 0], sizes = [3, 2, 9, 8], strides = [1, 1, 1, 1]} : vector<4x2x9x8xf32> to vector<3x2x9x8xf32>
    %5 = tpu.concatenate %4, %3 in 0 : vector<3x2x9x8xf32>, vector<1x2x9x8xf32> -> vector<4x2x9x8xf32>
    %6 = vector.extract_strided_slice %1 {offsets = [0, 0, 0, 0], sizes = [4, 1, 9, 8], strides = [1, 1, 1, 1]} : vector<4x2x9x8xf32> to vector<4x1x9x8xf32>
    %7 = vector.shape_cast %6 : vector<4x1x9x8xf32> to vector<4x9x8xf32>
    %8 = vector.extract_strided_slice %7 {offsets = [0, 0, 0], sizes = [4, 8, 8], strides = [1, 1, 1]} : vector<4x9x8xf32> to vector<4x8x8xf32>
    %9 = vector.extract_strided_slice %7 {offsets = [0, 1, 0], sizes = [4, 8, 8], strides = [1, 1, 1]} : vector<4x9x8xf32> to vector<4x8x8xf32>
    %10 = tpu.concatenate %8, %9 in 2 : vector<4x8x8xf32>, vector<4x8x8xf32> -> vector<4x8x16xf32>
    %11 = vector.extract_strided_slice %1 {offsets = [0, 1, 0, 0], sizes = [4, 1, 9, 8], strides = [1, 1, 1, 1]} : vector<4x2x9x8xf32> to vector<4x1x9x8xf32>
    %12 = vector.shape_cast %11 : vector<4x1x9x8xf32> to vector<4x9x8xf32>
    %13 = vector.extract_strided_slice %12 {offsets = [0, 0, 0], sizes = [4, 8, 8], strides = [1, 1, 1]} : vector<4x9x8xf32> to vector<4x8x8xf32>
    %14 = vector.extract_strided_slice %12 {offsets = [0, 1, 0], sizes = [4, 8, 8], strides = [1, 1, 1]} : vector<4x9x8xf32> to vector<4x8x8xf32>
    %15 = tpu.concatenate %13, %14 in 2 : vector<4x8x8xf32>, vector<4x8x8xf32> -> vector<4x8x16xf32>
    %16 = vector.extract_strided_slice %5 {offsets = [0, 0, 0, 0], sizes = [4, 1, 9, 8], strides = [1, 1, 1, 1]} : vector<4x2x9x8xf32> to vector<4x1x9x8xf32>
    %17 = vector.shape_cast %16 : vector<4x1x9x8xf32> to vector<4x9x8xf32>
    %18 = vector.extract_strided_slice %17 {offsets = [0, 0, 0], sizes = [4, 8, 8], strides = [1, 1, 1]} : vector<4x9x8xf32> to vector<4x8x8xf32>
    %19 = vector.extract_strided_slice %17 {offsets = [0, 1, 0], sizes = [4, 8, 8], strides = [1, 1, 1]} : vector<4x9x8xf32> to vector<4x8x8xf32>
    %20 = tpu.concatenate %18, %19 in 2 : vector<4x8x8xf32>, vector<4x8x8xf32> -> vector<4x8x16xf32>
    %21 = vector.extract_strided_slice %5 {offsets = [0, 1, 0, 0], sizes = [4, 1, 9, 8], strides = [1, 1, 1, 1]} : vector<4x2x9x8xf32> to vector<4x1x9x8xf32>
    %22 = vector.shape_cast %21 : vector<4x1x9x8xf32> to vector<4x9x8xf32>
    %23 = vector.extract_strided_slice %22 {offsets = [0, 0, 0], sizes = [4, 8, 8], strides = [1, 1, 1]} : vector<4x9x8xf32> to vector<4x8x8xf32>
    %24 = vector.extract_strided_slice %22 {offsets = [0, 1, 0], sizes = [4, 8, 8], strides = [1, 1, 1]} : vector<4x9x8xf32> to vector<4x8x8xf32>
    %25 = tpu.concatenate %23, %24 in 2 : vector<4x8x8xf32>, vector<4x8x8xf32> -> vector<4x8x16xf32>
    %26 = tpu.concatenate %10, %15, %20, %25 in 2 : vector<4x8x16xf32>, vector<4x8x16xf32>, vector<4x8x16xf32>, vector<4x8x16xf32> -> vector<4x8x64xf32>
    %27 = vector.shape_cast %26 : vector<4x8x64xf32> to vector<32x64xf32>
    %c0_9 = arith.constant 0 : index
    %c0_10 = arith.constant 0 : index
    %28 = vector.load %arg4[%c0_9, %c0_10] : memref<64x8xf32, #tpu.memory_space<vmem>>, vector<64x8xf32>
    %cst = arith.constant dense<0.000000e+00> : vector<32x8xf32>
    %29 = tpu.matmul %27, %28, %cst {dimension_numbers = #tpu.dot_dimension_numbers<[1], [0], [0], [1], [0, 0, 1, 1], [], []>} : vector<32x64xf32>, vector<64x8xf32>, vector<32x8xf32> -> vector<32x8xf32>
    %30 = vector.shape_cast %29 : vector<32x8xf32> to vector<4x8x8xf32>
    %c0_11 = arith.constant 0 : index
    %c0_12 = arith.constant 0 : index
    %c0_13 = arith.constant 0 : index
    %c0_14 = arith.constant 0 : index
    %31 = vector.load %arg5[%c0_11, %c0_12, %c0_13, %c0_14] : memref<1x4x8x8xf32, #tpu.memory_space<vmem>>, vector<1x4x8x8xf32>
    %32 = vector.shape_cast %31 : vector<1x4x8x8xf32> to vector<4x8x8xf32>
    %33 = vector.shape_cast %30 : vector<4x8x8xf32> to vector<1x4x8x8xf32>
    tpu.vector_store %arg5[%c0_11, %c0_12, %c0_13, %c0_14], %33 {strides = array<i32>} : memref<1x4x8x8xf32, #tpu.memory_space<vmem>>, vector<1x4x8x8xf32>,
    return
  }
  func.func @transform_0(%arg0: i32, %arg1: i32) -> (i32, i32, i32, i32, i32) {
    %c0_i32 = arith.constant 0 : i32
    %c0_i32_0 = arith.constant 0 : i32
    %c0_i32_1 = arith.constant 0 : i32
    %c0_i32_2 = arith.constant 0 : i32
    return %arg0, %arg1, %c0_i32, %c0_i32_0, %c0_i32_1 : i32, i32, i32, i32, i32
  }
  func.func @transform_1(%arg0: i32, %arg1: i32) -> (i32, i32, i32, i32, i32) {
    %c1_i32 = arith.constant 1 : i32
    %0 = arith.addi %arg1, %c1_i32 : i32
    %c4_i32 = arith.constant 4 : i32
    %1 = arith.muli %0, %c4_i32 : i32
    %c0_i32 = arith.constant 0 : i32
    %c0_i32_0 = arith.constant 0 : i32
    %c0_i32_1 = arith.constant 0 : i32
    %c0_i32_2 = arith.constant 0 : i32
    return %arg0, %1, %c0_i32, %c0_i32_0, %c0_i32_1 : i32, i32, i32, i32, i32
  }
  func.func @transform_2(%arg0: i32, %arg1: i32) -> (i32, i32) {
    %c0_i32 = arith.constant 0 : i32
    %c0_i32_0 = arith.constant 0 : i32
    %c0_i32_1 = arith.constant 0 : i32
    return %c0_i32, %c0_i32_0 : i32, i32
  }
  func.func @transform_3(%arg0: i32, %arg1: i32) -> (i32, i32, i32, i32) {
    %c0_i32 = arith.constant 0 : i32
    %c0_i32_0 = arith.constant 0 : i32
    %c0_i32_1 = arith.constant 0 : i32
    return %arg0, %arg1, %c0_i32, %c0_i32_0 : i32, i32, i32, i32
  }
}

</mosaic_0001>

<bundles_post_ra>
// kernel: downsample_forward.1
= control target key start
LH: loop header
LB: loop body
LE: loop exit
PB: predicated region body
PF: predicated region fallthrough
CT: control target
= control target key end

     0   :  { %s792_s12 = smov 0   ;;  %s794_s13 = smov 0   ;;  %s981_s0 = inlined_call_operand.vmem [shape: f32[2,9,2,9,8], index: 0, kind: input, shape index: {}, may-alias: {0,1}]   ;;  %s982_s1 = inlined_call_operand.vmem [shape: f32[2,9,2,9,8], index: 1, kind: input, shape index: {}, may-alias: {0,1}]   ;;  %s983_s2 = inlined_call_operand.vmem [shape: f32[64,8], index: 2, kind: input, shape index: {}]   ;;  %s984_s3 = inlined_call_operand.vmem [shape: f32[2,8,8,8], index: 3, kind: output, shape index: {}]  }
   0x1   :  { %s796_s14 = smov 0   ;;  %s798_s15 = smov 0  }
   0x2   :  { %s800_s16 = smov 0  }
   0x3 LB: > { %s22_s17 = sadd.s32 1, %s758_s14  ;;  %s25_s18 = sadd.s32 1, %s762_s15  ;;  %s766_s16 = sphi %s800_s16, %s13_s16   ;;  %s762_s15 = sphi %s798_s15, %s988_s15   ;;  %s758_s14 = sphi %s796_s14, %s987_s14   ;;  %s754_s13 = sphi %s794_s13, %s986_s13   ;;  %s750_s12 = sphi %s792_s12, %s985_s12  }
   0x4   : > { %p23_p0 = scmp.ge.s32.totalorder %s22_s17, 2  ;;  %p637_p1 = scmp.ge.s32.totalorder %s766_s16, 1 }
   0x5   : > { %p195_p2 = scmp.lt.s32.totalorder %s766_s16, 5 }
   0x6   : > { %s990_s17 = smov (%p23_p0, %s22_s17), 0  ;;  %s992_s18 = smov (!%p23_p0, %s25_s18), %s762_s15 }
   0x7   : > { %p196_p3 = pnand %p637_p1, %p195_p2  ;;  %p27_p4 = scmp.ge.s32.totalorder %s992_s18, 2 }
   0x8   : > { %s822_s19 = sshll.u32 (!%p196_p3), %s750_s12, 2  ;;  %p252_p5 = scmp.lt.s32.totalorder (!%p196_p3), %s754_s13, 1 }
   0x9   : > { %s994_s18 = smov (%p27_p4, %s992_s18), 0  ;;  %199 = sbr.rel (%p196_p3) target bundleno = 418 (0x1a2), region = 32 }
   0xa   : > { %p254_p6 = scmp.lt.s32.totalorder (!%p196_p3), %s822_s19, 8  ;;  %s658_s22 = sadd.s32 (!%p196_p3), 4, %s822_s19 }
   0xb   : > { %p272_p7 = scmp.lt.s32.totalorder (!%p196_p3), %s658_s22, 8  ;;  %s768_s4 = smov (!%p196_p3), 8  }
   0xc   : > { %s769_s9 = smov (!%p196_p3), 32   ;;  %s770_s10 = smov (!%p196_p3), 16  }
   0xd   : > { %s771_s11 = smov (!%p196_p3), 48   ;;  %p284_p8 = scmp.lt.s32.totalorder (!%p196_p3), %s822_s19, 7 }
   0xe   : > { %s996_s13 = smov (!%p252_p5, %s754_s13), 1  ;;  %vm319_vm0 = vcmask 1046528   ;;  %s998_s22 = smov (!%p272_p7, %s658_s22), 8  ;;  %vm344_vm1 = vcmask 64512   ;;  %vm448_vm2 = vcmask 130048   ;;  %vm453_vm3 = vcmask 261120  }
   0xf   : > { %s255_s20 = scalar_select %p254_p6, %s822_s19, 8  ;;  %vm458_vm4 = vcmask 392192   ;;  %vm471_vm5 = vcmask 523264  }
  0x10   : > { %s683_s21 = smul.u32 36, %s996_s13  ;;  %s642_s29 = sshll.u32 %s998_s22, 2 }
  0x11   : > { %s639_s23 = sshll.u32 %s255_s20, 2  ;;  %s1000_s19 = smov (!%p284_p8, %s822_s19), 7 }
  0x12   : > { %s258_s24 = sadd.s32 %s683_s21, %s639_s23  ;;  %s276_s30 = sadd.s32 %s683_s21, %s642_s29 }
  0x13   : > { %s640_s25 = sshll.u32 %s258_s24, 3  ;;  %s643_s5 = sshll.u32 %s276_s30, 3 }
  0x14   : > { %s833_s28 = scalar_lea.vmem %s981_s0, %s640_s25  ;;  %s278_s8 = scalar_lea.vmem %s982_s1, %s643_s5 }
  0x15   : > { %v836_v0 = vld [vmem:[%s833_s28 + $0x60] sm:$0xff]  ;;  %v304_v1 = vld [vmem:[%s833_s28 + $0x68] sm:$0x1]  ;;  %v840_v2 = vld [vmem:[%s833_s28 + $0x50] sm:$0xff] }
  0x16   : > { %v329_v3 = vrot.slane %v836_v0, 1  ;;  %v330_v4 = vrot.slane %v304_v1, 1  ;;  %v302_v5 = vld [vmem:[%s833_s28 + $0x58] sm:$0x1]  ;;  %v363_v6 = vrot.slane %v840_v2, 1  ;;  %v847_v9 = vld [vmem:[%s833_s28 + $0x70] sm:$0xff] }
  0x17   : > { %v364_v7 = vrot.slane %v302_v5, 1  ;;  %v306_v10 = vld [vmem:[%s833_s28 + $0x78] sm:$0x1]  ;;  %v851_v11 = vld [vmem:[%s833_s28 + $0x10] sm:$0xff]  ;;  %v861_v15 = vld [vmem:[%s278_s8] sm:$0xff]  ;;  %v366_v17 = vrot.slane %v847_v9, 1 }
  0x18   : > { %v331_v8 = vsel %vm319_vm0, %v329_v3, %v330_v4  ;;  %v357_v13 = vrot.slane %v851_v11, 1  ;;  %v294_v14 = vld [vmem:[%s833_s28 + $0x18] sm:$0x1]  ;;  %v308_v16 = vld [vmem:[%s278_s8 + $0x8] sm:$0x1]  ;;  %v367_v18 = vrot.slane %v306_v10, 1 }
  0x19   : > { %338 = vrot.lane.b32.xlu1 %v331_v8, %s768_s4  ;;  %v365_v12 = vsel %vm319_vm0, %v363_v6, %v364_v7  ;;  %v358_v19 = vrot.slane %v294_v14, 1  ;;  %v387_v20 = vrot.slane %v861_v15, 1  ;;  %v388_v21 = vrot.slane %v308_v16, 1  ;;  %v309_v22 = vld [vmem:[%s278_s8 + $0x10] sm:$0xff]  ;;  %v310_v23 = vld [vmem:[%s278_s8 + $0x18] sm:$0x1] }
  0x1a   : > { %373 = vrot.lane.b32.xlu0 %v365_v12, %s768_s4  ;;  %v368_v26 = vsel %vm319_vm0, %v366_v17, %v367_v18  ;;  %v295_v27 = vld [vmem:[%s833_s28 + $0x20] sm:$0xff]  ;;  %v296_v28 = vld [vmem:[%s833_s28 + $0x28] sm:$0x1]  ;;  %v396_v29 = vrot.slane %v309_v22, 1  ;;  %v397_v30 = vrot.slane %v310_v23, 1  ;;  %v297_v31 = vld [vmem:[%s833_s28 + $0x30] sm:$0xff] }
  0x1b   : > { %v359_v24 = vsel %vm319_vm0, %v357_v13, %v358_v19  ;;  %v389_v25 = vsel %vm319_vm0, %v387_v20, %v388_v21  ;;  %v298_v32 = vld [vmem:[%s833_s28 + $0x38] sm:$0x1]  ;;  %v323_v33 = vrot.slane %v295_v27, 1  ;;  %v324_v34 = vrot.slane %v296_v28, 1  ;;  %v299_v38 = vld [vmem:[%s833_s28 + $0x40] sm:$0xff]  ;;  %v469_v5 = vld [vmem:[%s983_s2 + $0x30] sm:$0xff] }
  0x1c   : > { %369 = vrot.lane.b32.xlu2 %v359_v24, %s768_s4  ;;  %v360_v35 = vrot.slane %v297_v31, 1  ;;  %v361_v36 = vrot.slane %v298_v32, 1  ;;  %v398_v37 = vsel %vm319_vm0, %v396_v29, %v397_v30  ;;  %v300_v39 = vld [vmem:[%s833_s28 + $0x48] sm:$0x1]  ;;  %v326_v42 = vrot.slane %v299_v38, 1  ;;  %v882_v44 = vld [vmem:[%s833_s28] sm:$0xff] }
  0x1d   : > { %v325_v40 = vsel %vm319_vm0, %v323_v33, %v324_v34  ;;  %v327_v43 = vrot.slane %v300_v39, 1  ;;  %v292_v45 = vld [vmem:[%s833_s28 + $0x8] sm:$0x1]  ;;  %v320_v47 = vrot.slane %v882_v44, 1  ;;  %v470_v4 = vld [vmem:[%s983_s2 + $0x38] sm:$0xff]  ;;  %v467_v7 = vld [vmem:[%s983_s2 + $0x20] sm:$0xff] }
  0x1e   : > { %v362_v41 = vsel %vm319_vm0, %v360_v35, %v361_v36  ;;  %v321_v48 = vrot.slane %v292_v45, 1  ;;  %660 = vmatpush.msra.mxu2 %v470_v4  ;;  %661 = vmatpush.msra.mxu3 %v470_v4  ;;  %v468_v6 = vld [vmem:[%s983_s2 + $0x28] sm:$0xff]  ;;  %v466_v8 = vld [vmem:[%s983_s2 + $0x18] sm:$0xff]  ;;  %s645_s8 = sshll.u32 %s996_s13, 3 }
  0x1f   : > { %v328_v46 = vsel %vm319_vm0, %v326_v42, %v327_v43  ;;  %492 = vmatpush.msra.mxu0 %v470_v4  ;;  %659 = vmatpush.msra.mxu1 %v470_v4  ;;  %v464_v10 = vld [vmem:[%s983_s2 + $0x8] sm:$0xff] }
  0x20   : > { %v322_v49 = vsel %vm319_vm0, %v320_v47, %v321_v48  ;;  %663 = vmatpush.msra.mxu2 %v469_v5  ;;  %664 = vmatpush.msra.mxu3 %v469_v5 }
  0x21   : > { %390 = vrot.lane.b32.xlu1 %v389_v25, %s768_s4  ;;  %493 = vmatpush.msra.mxu0 %v469_v5 }
  0x22   : > { %375 = vrot.lane.b32.xlu0 %v368_v26, %s768_s4  ;;  %662 = vmatpush.msra.mxu1 %v469_v5 }
  0x23   : > { %666 = vmatpush.msra.mxu2 %v468_v6  ;;  %667 = vmatpush.msra.mxu3 %v468_v6 }
  0x24   : > { %399 = vrot.lane.b32.xlu2 %v398_v37, %s768_s4  ;;  %494 = vmatpush.msra.mxu0 %v468_v6 }
  0x25   : > { %665 = vmatpush.msra.mxu1 %v468_v6  ;;  %669 = vmatpush.msra.mxu2 %v467_v7 }
  0x26   : > { %670 = vmatpush.msra.mxu3 %v467_v7  ;;  %495 = vmatpush.msra.mxu0 %v467_v7 }
  0x27   : > { %668 = vmatpush.msra.mxu1 %v467_v7  ;;  %672 = vmatpush.msra.mxu2 %v466_v8 }
  0x28   : > { %673 = vmatpush.msra.mxu3 %v466_v8  ;;  %496 = vmatpush.msra.mxu0 %v466_v8 }
  0x29   : > { %334 = vrot.lane.b32.xlu1 %v325_v40, %s768_s4  ;;  %671 = vmatpush.msra.mxu1 %v466_v8 }
  0x2a   : > { %371 = vrot.lane.b32.xlu0 %v362_v41, %s768_s4 }
  0x2c   : > { %336 = vrot.lane.b32.xlu2 %v328_v46, %s768_s4 }
  0x32   : > { %332 = vrot.lane.b32.xlu0 %v322_v49, %s768_s4 }
  0x76   : > { %v370_v56 = vpop.permute.xlu2 %369 }
  0x77   : > { %v381_v1 = vsel %vm344_vm1, %v851_v11, %v370_v56  ;;  %v463_v11 = vld [vmem:[%s983_s2] sm:$0xff] }
  0x7e   : > { %v400_v62 = vpop.permute.xlu2 %399 }
  0x7f   : > { %v402_v63 = vsel %vm344_vm1, %v309_v22, %v400_v62 }
  0x8b   : > { %v339_v50 = vpop.permute.xlu1 %338 }
  0x8c   : > { %v374_v51 = vpop.permute.xlu0 %373  ;;  %v894_v52 = vsel %vm344_vm1, %v836_v0, %v339_v50 }
  0x8d   : > { %v383_v53 = vsel %vm344_vm1, %v840_v2, %v374_v51  ;;  %427 = vrot.lane.b32.xlu2 %v894_v52, %s769_s9  ;;  %v337_v2 = vpop.permute.xlu2 %336 }
  0x8e   : > { %411 = vrot.lane.b32.xlu0 %v383_v53, %s770_s10  ;;  %v347_v3 = vsel %vm344_vm1, %v299_v38, %v337_v2 }
  0x93   : > { %v391_v54 = vpop.permute.xlu1 %390 }
  0x94   : > { %v376_v55 = vpop.permute.xlu0 %375  ;;  %v393_v0 = vsel %vm344_vm1, %v861_v15, %v391_v54 }
  0x95   : > { %v384_v57 = vsel %vm344_vm1, %v847_v9, %v376_v55  ;;  %v465_v9 = vld [vmem:[%s983_s2 + $0x10] sm:$0xff] }
  0x96   : > { %413 = vrot.lane.b32.xlu1 %v384_v57, %s770_s10  ;;  %675 = vmatpush.msra.mxu2 %v465_v9 }
  0x97   : > { %676 = vmatpush.msra.mxu3 %v465_v9  ;;  %497 = vmatpush.msra.mxu0 %v465_v9 }
  0x98   : > { %674 = vmatpush.msra.mxu1 %v465_v9  ;;  %678 = vmatpush.msra.mxu2 %v464_v10 }
  0x99   : > { %679 = vmatpush.msra.mxu3 %v464_v10  ;;  %498 = vmatpush.msra.mxu0 %v464_v10 }
  0x9a   : > { %677 = vmatpush.msra.mxu1 %v464_v10  ;;  %681 = vmatpush.msra.mxu2 %v463_v11 }
  0x9b   : > { %v335_v58 = vpop.permute.xlu1 %334  ;;  %682 = vmatpush.msra.mxu3 %v463_v11  ;;  %499 = vmatpush.msra.mxu0 %v463_v11 }
  0x9c   : > { %v372_v59 = vpop.permute.xlu0 %371  ;;  %v902_v60 = vsel %vm344_vm1, %v295_v27, %v335_v58  ;;  %680 = vmatpush.msra.mxu1 %v463_v11 }
  0x9d   : > { %v382_v61 = vsel %vm344_vm1, %v297_v31, %v372_v59  ;;  %423 = vrot.lane.b32.xlu0 %v902_v60, %s769_s9 }
  0x9e   : > { %440 = vrot.lane.b32.xlu1 %v384_v57, %s771_s11  ;;  %409 = vrot.lane.b32.xlu2 %v382_v61, %s770_s10 }
  0xa4   : > { %v333_v12 = vpop.permute.xlu0 %332 }
  0xa5   : > { %429 = vrot.lane.b32.xlu0 %v393_v0, %s769_s9  ;;  %v345_v25 = vsel %vm344_vm1, %v882_v44, %v333_v12 }
  0xa6   : > { %407 = vrot.lane.b32.xlu1 %v381_v1, %s770_s10  ;;  %442 = vrot.lane.b32.xlu2 %v402_v63, %s771_s11 }
  0xad   : > { %438 = vrot.lane.b32.xlu0 %v383_v53, %s771_s11 }
  0xae   : > { %425 = vrot.lane.b32.xlu1 %v347_v3, %s769_s9  ;;  %436 = vrot.lane.b32.xlu2 %v382_v61, %s771_s11  ;;  %s287_s9 = sadd.s32 %s645_s8, %s1000_s19 }
  0xaf   : > { %s646_s10 = sshll.u32 %s287_s9, 3 }
  0xb0   : > { %s289_s20 = scalar_lea.vmem %s984_s3, %s646_s10 }
  0xe7   : > { %v428_v13 = vpop.permute.xlu2 %427 }
  0xf8   : > { %v410_v15 = vpop.permute.xlu2 %409 }
  0xf9   : > { %v450_v34 = vsel %vm448_vm2, %v902_v60, %v410_v15 }
 0x100   : > { %v412_v14 = vpop.permute.xlu0 %411  ;;  %v443_v22 = vpop.permute.xlu2 %442 }
 0x101   : > { %v451_v17 = vsel %vm448_vm2, %v347_v3, %v412_v14 }
 0x102   : > { %v456_v20 = vsel %vm453_vm3, %v451_v17, %v428_v13 }
 0x108   : > { %v414_v16 = vpop.permute.xlu1 %413  ;;  %v437_v30 = vpop.permute.xlu2 %436 }
 0x109   : > { %v452_v23 = vsel %vm448_vm2, %v894_v52, %v414_v16 }
 0x10f   : > { %v424_v18 = vpop.permute.xlu0 %423 }
 0x110   : > { %v441_v19 = vpop.permute.xlu1 %440 }
 0x111   : > { %v461_v21 = vsel %vm458_vm4, %v456_v20, %v441_v19 }
 0x112   : > { %649 = vmatmul.msk.f32.vlgmr.msra.gmra.mxu2 %vm471_vm5, %v461_v21 }
 0x117   : > { %v430_v24 = vpop.permute.xlu0 %429 }
 0x118   : > { %v408_v26 = vpop.permute.xlu1 %407  ;;  %v457_v27 = vsel %vm453_vm3, %v452_v23, %v430_v24 }
 0x119   : > { %v449_v28 = vsel %vm448_vm2, %v345_v25, %v408_v26  ;;  %v462_v29 = vsel %vm458_vm4, %v457_v27, %v443_v22 }
 0x11a   : > { %650 = vmatmul.msk.f32.vlgmr.msra.gmra.mxu3 %vm471_vm5, %v462_v29  ;;  %v454_v31 = vsel %vm453_vm3, %v449_v28, %v424_v18 }
 0x11b   : > { %v459_v32 = vsel %vm458_vm4, %v454_v31, %v437_v30 }
 0x11c   : > { %647 = vmatmul.msk.f32.vlgmr.msra.gmra.mxu0 %vm471_vm5, %v459_v32 }
 0x11f   : > { %v439_v33 = vpop.permute.xlu0 %438 }
 0x120   : > { %v426_v35 = vpop.permute.xlu1 %425 }
 0x121   : > { %v455_v36 = vsel %vm453_vm3, %v450_v34, %v426_v35 }
 0x122   : > { %v460_v37 = vsel %vm458_vm4, %v455_v36, %v439_v33 }
 0x123   : > { %648 = vmatmul.msk.f32.vlgmr.msra.gmra.mxu1 %vm471_vm5, %v460_v37 }
 0x195   : > { %v507_v38 = vpop.f32.mrf.mxu2 }
 0x196   : > { %515 = vst.msk [vmem:[%s289_s20 + $0x10] sm:$0xff] %vm344_vm1, %v507_v38 }
 0x199   : > { %v501_v39 = vpop.f32.mrf.mxu0 }
 0x19a   : > { %513 = vst.msk [vmem:[%s289_s20] sm:$0xff] %vm344_vm1, %v501_v39 }
 0x19d   : > { %v510_v40 = vpop.f32.mrf.mxu3 }
 0x19e   : > { %516 = vst.msk [vmem:[%s289_s20 + $0x18] sm:$0xff] %vm344_vm1, %v510_v40 }
 0x1a0   : > { %v504_v41 = vpop.f32.mrf.mxu1 }
 0x1a1   : > { %514 = vst.msk [vmem:[%s289_s20 + $0x8] sm:$0xff] %vm344_vm1, %v504_v41 }
 0x1a2 PF: > { %s13_s16 = sadd.s32 1, %s766_s16   ;;  %s985_s12 = smov %s758_s14 }
 0x1a3   : > { %p10_p9 = scmp.ge.s32.totalorder %s13_s16, 6   ;;  %s986_s13 = smov %s762_s15 }
 0x1a4   : > { %s987_s14 = smov %s990_s17  ;;  %s988_s15 = smov %s994_s18 }
 0x1a5   :  { %12 = sbr.rel (!%p10_p9) target bundleno = 3 (0x3), region = 65 }

</bundles_post_ra>
